<compile_context>
chip_gen: v7x
topology: tpu7x:2x2x1
jax: 0.10.0
libtpu: 0.0.40
codegen_flags: <defaults>
</compile_context>

<pallas_src>
import functools
import math

import jax
import jax.numpy as jnp
from jax.experimental import pallas as pl
from jax.experimental.pallas import tpu as pltpu

_NEG_LOG_EPS = -math.log(1.0e-4)   # -log of the clamped off-target one-hot value
_PROB_MIN = 1.0e-7                 # torch.clamp(prob, min=1e-7)


def _rce_partial_kernel(x_ref, t_ref, out_ref, *, num_valid, tile_n, num_classes):
    """One row tile -> one f32 partial sum of per-sample reverse-CE losses.

    x_ref  : (TILE_N, C) logits, natural (N, C) HBM layout (no wrapper copy)
    t_ref  : (1, TILE_N) int32 class ids
    out_ref: (1, 128)    f32; lane 0 holds this tile's partial loss sum
    """
    # Upcast, then move classes onto sublanes / samples onto lanes via an
    # in-kernel XLU transpose (review item 1: keep the (N, C) HBM layout and
    # transpose inside the kernel instead of a standalone XLA copy).
    x = x_ref[...].astype(jnp.float32)                       # (TILE_N, C)
    xt = jnp.transpose(x, (1, 0))                            # (C, TILE_N)
    t = t_ref[...]                                           # (1, TILE_N)

    # Numerically stable softmax along the class (sublane) axis.
    m = jnp.max(xt, axis=0, keepdims=True)                   # (1, TILE_N)
    e = jnp.exp(xt - m)                                      # EUP, compact layout
    denom = jnp.sum(e, axis=0, keepdims=True)                # (1, TILE_N)
    prob = e * pl.reciprocal(denom, approx=False)            # (C, TILE_N)
    prob = jnp.maximum(prob, _PROB_MIN)                      # upper clamp at 1.0 is a no-op

    # loss_i = -log(1e-4) * sum over non-target classes of prob — no log pass.
    # (C, 1) sublane iota broadcast in the compare (review: avoid full-tile iota).
    class_ids = jax.lax.broadcasted_iota(jnp.int32, (num_classes, 1), 0)
    non_target = jnp.where(class_ids == t, 0.0, prob)        # (C, TILE_N)
    per_sample = _NEG_LOG_EPS * jnp.sum(non_target, axis=0, keepdims=True)

    # Mask columns past the real batch (the last tile may overrun N; the
    # out-of-bounds rows hold undefined values, confined column-wise here).
    col = pl.program_id(0) * tile_n + jax.lax.broadcasted_iota(
        jnp.int32, (1, tile_n), 1)
    per_sample = jnp.where(col < num_valid, per_sample, 0.0)

    # Fused reduction (review item 5): one partial sum per tile, lane 0 of a
    # lane-dense (1, 128) output block.
    partial = jnp.sum(per_sample)
    lane = jax.lax.broadcasted_iota(jnp.int32, (1, 128), 1)
    out_ref[...] = jnp.where(lane == 0, partial, 0.0)


def rce_loss(x, target, num_classes=10, reduction="mean", max_tile_rows=16384):
    """Reverse-CE loss. Wrapper does layout-free plumbing only (reshapes).

    max_tile_rows: rows per grid tile.  The (TILE_N, C=10) input block is
    lane-padded in VMEM (~0.5 KB/row), so 16384 rows ~= 8 MiB/buffer and
    ~20 MiB/step double-buffered — within the v7x (64 MiB VMEM) guidance;
    v5e/v6e can raise this to 32768 under the 48 MiB scoped limit below.
    Note: like the JAX reference (and unlike torch.F.one_hot), out-of-range
    targets silently yield the 'no matching class' loss rather than raising.
    """
    n, c = x.shape
    assert c == num_classes
    if reduction not in ("mean", "sum"):
        # TODO(synk): per-sample (reduction='none') output path was not ported to
        # the fused-partial kernel; the module default ('mean') is what is used.
        raise NotImplementedError("reduction must be 'mean' or 'sum'")

    t_row = target.astype(jnp.int32).reshape(1, n)   # free reshape, no HBM copy

    # Tiny batches (< one 128-row tile): pad rows up once (negligible copy).
    if n < 128:
        x = jnp.pad(x, ((0, 128 - n), (0, 0)))
        t_row = jnp.pad(t_row, ((0, 0), (0, 128 - n)))
        n_rows = 128
    else:
        n_rows = n

    # Balanced tiles (review item 2/4): multiples of 128, never larger than the
    # array, >=2 tiles for moderate batches so both v7x TensorCores are used.
    num_tiles = pl.cdiv(n_rows, max_tile_rows)
    if n_rows >= 4096:
        num_tiles = max(num_tiles, 2)
    tile_n = pl.cdiv(pl.cdiv(n_rows, num_tiles), 128) * 128
    tile_n = max(128, min(tile_n, (n_rows // 128) * 128))
    num_tiles = pl.cdiv(n_rows, tile_n)

    kernel = functools.partial(_rce_partial_kernel, num_valid=n,
                               tile_n=tile_n, num_classes=c)

    partials = pl.pallas_call(
        kernel,
        out_shape=jax.ShapeDtypeStruct((1, 128 * num_tiles), jnp.float32),
        grid_spec=pltpu.PrefetchScalarGridSpec(
            num_scalar_prefetch=0,
            grid=(num_tiles,),
            in_specs=[
                pl.BlockSpec((tile_n, c), lambda i: (i, 0)),   # natural-layout logits
                pl.BlockSpec((1, tile_n), lambda i: (0, i)),   # targets
            ],
            out_specs=pl.BlockSpec((1, 128), lambda i: (0, i)),
        ),
        compiler_params=pltpu.CompilerParams(
            dimension_semantics=("parallel",),        # shard tiles across v7x TCs
            vmem_limit_bytes=48 * 1024 * 1024,        # headroom, < v7x physical
        ),
        cost_estimate=pl.CostEstimate(
            flops=8 * n * c,
            transcendentals=n * c,                    # exp
            bytes_accessed=n * c * x.dtype.itemsize + n * 4 + num_tiles * 512,
        ),
    )(x, t_row)

    total = jnp.sum(partials)                         # num_tiles values only
    return total / n if reduction == "mean" else total


def _rce_loss_ref(x, target, num_classes=10):
    """Pure-JAX reference mirroring the PyTorch forward (reduction='mean')."""
    prob = jax.nn.softmax(x.astype(jnp.float32), axis=-1)
    prob = jnp.clip(prob, 1e-07, 1.0)
    one_hot = jax.nn.one_hot(target, num_classes, dtype=jnp.float32)
    one_hot = jnp.clip(one_hot, 0.0001, 1.0)
    return jnp.mean(-jnp.sum(prob * jnp.log(one_hot), axis=-1))


if __name__ == "__main__":
    num_classes = 10
    key = jax.random.PRNGKey(0)
    kx, kt, kx2, kt2 = jax.random.split(key, 4)

    # Small single-tile case (batch=8), exercises the tiny-batch pad + masking.
    batch = 8
    x = jax.random.normal(kx, (batch, num_classes), dtype=jnp.float32)
    target = jax.random.randint(kt, (batch,), 0, num_classes, dtype=jnp.int32)
    out = jax.block_until_ready(rce_loss(x, target, num_classes=num_classes))
    ref = _rce_loss_ref(x, target, num_classes)
    assert jnp.allclose(out, ref, rtol=1e-5, atol=1e-5), (out, ref)

    # Multi-tile case: 300 samples with 128-row tiles -> grid of 3, last tile
    # partially out-of-bounds (exercises edge-block reads, masking, partials).
    batch2 = 300
    x2 = jax.random.normal(kx2, (batch2, num_classes), dtype=jnp.float32)
    target2 = jax.random.randint(kt2, (batch2,), 0, num_classes, dtype=jnp.int32)
    out2 = jax.block_until_ready(
        rce_loss(x2, target2, num_classes=num_classes, max_tile_rows=128))
    ref2 = _rce_loss_ref(x2, target2, num_classes)
    assert jnp.allclose(out2, ref2, rtol=1e-5, atol=1e-5), (out2, ref2)

    print("KERNEL_OK")
</pallas_src>

<mosaic_0001>
module attributes {stable_mosaic.version = 11 : i64} {
  func.func @_rce_partial_kernel(%arg0: i32, %arg1: memref<128x10xf32, #tpu.memory_space<vmem>>, %arg2: memref<1x128xi32, #tpu.memory_space<vmem>>, %arg3: memref<1x128xf32, #tpu.memory_space<vmem>>) attributes {dimension_semantics = [#tpu.dimension_semantics<parallel>], iteration_bounds = array<i64: 1>, scalar_prefetch = 0 : i64, scratch_operands = 0 : i64, tpu.core_type = #tpu.core_type<tc>, window_params = [{transform_indices = @transform_0, window_bounds = array<i64: 128, 10>}, {transform_indices = @transform_1, window_bounds = array<i64: 1, 128>}, {transform_indices = @transform_2, window_bounds = array<i64: 1, 128>}]} {
    %c0 = arith.constant 0 : index
    %c0_0 = arith.constant 0 : index
    %0 = vector.load %arg1[%c0, %c0_0] : memref<128x10xf32, #tpu.memory_space<vmem>>, vector<128x10xf32>
    %1 = tpu.transpose %0, [1, 0] : vector<128x10xf32> -> vector<10x128xf32>
    %c0_1 = arith.constant 0 : index
    %c0_2 = arith.constant 0 : index
    %2 = vector.load %arg2[%c0_1, %c0_2] : memref<1x128xi32, #tpu.memory_space<vmem>>, vector<1x128xi32>
    %cst = arith.constant dense<0xFF800000> : vector<128xf32>
    %3 = vector.multi_reduction <maximumf>, %1, %cst [0] : vector<10x128xf32> to vector<128xf32>
    %4 = vector.shape_cast %3 : vector<128xf32> to vector<1x128xf32>
    %5 = vector.broadcast %4 : vector<1x128xf32> to vector<10x128xf32>
    %6 = arith.subf %1, %5 : vector<10x128xf32>
    %7 = math.exp %6 : vector<10x128xf32>
    %cst_3 = arith.constant dense<0.000000e+00> : vector<128xf32>
    %8 = vector.multi_reduction <add>, %7, %cst_3 [0] : vector<10x128xf32> to vector<128xf32>
    %9 = vector.shape_cast %8 : vector<128xf32> to vector<1x128xf32>
    %10 = tpu.reciprocal %9 : vector<1x128xf32> -> vector<1x128xf32>
    %11 = vector.broadcast %10 : vector<1x128xf32> to vector<10x128xf32>
    %12 = arith.mulf %7, %11 : vector<10x128xf32>
    %cst_4 = arith.constant 1.000000e-07 : f32
    %13 = vector.broadcast %cst_4 : f32 to vector<10x128xf32>
    %14 = arith.maximumf %12, %13 : vector<10x128xf32>
    %15 = tpu.iota {dimensions = array<i32: 0>} : vector<10x1xi32>
    %16 = vector.broadcast %15 : vector<10x1xi32> to vector<10x128xi32>
    %17 = vector.broadcast %2 : vector<1x128xi32> to vector<10x128xi32>
    %18 = arith.cmpi eq, %16, %17 : vector<10x128xi32>
    %cst_5 = arith.constant 0.000000e+00 : f32
    %19 = vector.broadcast %cst_5 : f32 to vector<10x128xf32>
    %20 = arith.select %18, %19, %14 : vector<10x128xi1>, vector<10x128xf32>
    %cst_6 = arith.constant dense<0.000000e+00> : vector<128xf32>
    %21 = vector.multi_reduction <add>, %20, %cst_6 [0] : vector<10x128xf32> to vector<128xf32>
    %22 = vector.shape_cast %21 : vector<128xf32> to vector<1x128xf32>
    %cst_7 = arith.constant 9.21034049 : f32
    %23 = vector.broadcast %cst_7 : f32 to vector<1x128xf32>
    %24 = arith.mulf %23, %22 : vector<1x128xf32>
    %c128_i32 = arith.constant 128 : i32
    %25 = arith.muli %arg0, %c128_i32 : i32
    %26 = tpu.iota {dimensions = array<i32: 1>} : vector<1x128xi32>
    %27 = vector.broadcast %25 : i32 to vector<1x128xi32>
    %28 = arith.addi %27, %26 : vector<1x128xi32>
    %c8_i32 = arith.constant 8 : i32
    %29 = vector.broadcast %c8_i32 : i32 to vector<1x128xi32>
    %30 = arith.cmpi slt, %28, %29 : vector<1x128xi32>
    %cst_8 = arith.constant 0.000000e+00 : f32
    %31 = vector.broadcast %cst_8 : f32 to vector<1x128xf32>
    %32 = arith.select %30, %24, %31 : vector<1x128xi1>, vector<1x128xf32>
    %33 = vector.shape_cast %32 : vector<1x128xf32> to vector<1x1x128xf32>
    %cst_9 = arith.constant dense<0.000000e+00> : vector<1xf32>
    %34 = vector.multi_reduction <add>, %33, %cst_9 [1, 2] : vector<1x1x128xf32> to vector<1xf32>
    %35 = vector.shape_cast %34 : vector<1xf32> to vector<1x1x1xf32>
    %36 = vector.extract %35[0, 0, 0] : f32 from vector<1x1x1xf32>
    %37 = tpu.iota {dimensions = array<i32: 1>} : vector<1x128xi32>
    %c0_i32 = arith.constant 0 : i32
    %38 = vector.broadcast %c0_i32 : i32 to vector<1x128xi32>
    %39 = arith.cmpi eq, %37, %38 : vector<1x128xi32>
    %cst_10 = arith.constant 0.000000e+00 : f32
    %40 = vector.broadcast %36 : f32 to vector<1x128xf32>
    %41 = vector.broadcast %cst_10 : f32 to vector<1x128xf32>
    %42 = arith.select %39, %40, %41 : vector<1x128xi1>, vector<1x128xf32>
    %c0_11 = arith.constant 0 : index
    %c0_12 = arith.constant 0 : index
    %43 = vector.load %arg3[%c0_11, %c0_12] : memref<1x128xf32, #tpu.memory_space<vmem>>, vector<1x128xf32>
    tpu.vector_store %arg3[%c0_11, %c0_12], %42 {strides = array<i32>} : memref<1x128xf32, #tpu.memory_space<vmem>>, vector<1x128xf32>,
    return
  }
  func.func @transform_0(%arg0: i32) -> (i32, i32) {
    %c0_i32 = arith.constant 0 : i32
    %c0_i32_0 = arith.constant 0 : i32
    return %arg0, %c0_i32 : i32, i32
  }
  func.func @transform_1(%arg0: i32) -> (i32, i32) {
    %c0_i32 = arith.constant 0 : i32
    %c0_i32_0 = arith.constant 0 : i32
    return %c0_i32, %arg0 : i32, i32
  }
  func.func @transform_2(%arg0: i32) -> (i32, i32) {
    %c0_i32 = arith.constant 0 : i32
    %c0_i32_0 = arith.constant 0 : i32
    return %c0_i32, %arg0 : i32, i32
  }
}

</mosaic_0001>

<bundles_post_ra>
// kernel: tpu_custom_call.1
= control target key start
LH: loop header
LB: loop body
LE: loop exit
PB: predicated region body
PF: predicated region fallthrough
CT: control target
= control target key end

     0   :  { %s261_s0 = inlined_call_operand.vmem [shape: f32[128,10], index: 0, kind: input, shape index: {}]   ;;  %s262_s1 = inlined_call_operand.vmem [shape: s32[1,128], index: 1, kind: input, shape index: {}]   ;;  %s263_s2 = inlined_call_operand.hbm [shape: f32[1,128], index: 2, kind: output, shape index: {}]  }
   0x1   :  { %v12_v0 = vld [vmem:[%s261_s0] sm:$0xff]  ;;  %v13_v1 = vld [vmem:[%s261_s0 + $0x8] sm:$0xff]  ;;  %v14_v2 = vld [vmem:[%s261_s0 + $0x10] sm:$0xff] }
   0x2   :  { %28 = vxpose.xlu0.b32.start [1/16] (narrow) %v12_v0, 16 }
   0x6   :  { %29 = vxpose.xlu0.b32.cont [2/16] (narrow) %v13_v1, 16 }
   0x7   :  { %7 = vsyncpa [#allocation3], 0  ;;  %v15_v3 = vld [vmem:[%s261_s0 + $0x18] sm:$0xff]  ;;  %v16_v4 = vld [vmem:[%s261_s0 + $0x20] sm:$0xff]  ;;  %vm61_vm0 = vcmask 1041408   ;;  %v89_v40 = vlaneseq  ;;  %vm116_vm4 = vcmask 1040384  }
   0x8   :  { %v17_v5 = vld [vmem:[%s261_s0 + $0x28] sm:$0xff]  ;;  %v18_v6 = vld [vmem:[%s261_s0 + $0x30] sm:$0xff]  ;;  %v19_v7 = vld [vmem:[%s261_s0 + $0x38] sm:$0xff] }
   0x9   :  { %v20_v8 = vld [vmem:[%s261_s0 + $0x40] sm:$0xff]  ;;  %v21_v9 = vld [vmem:[%s261_s0 + $0x48] sm:$0xff]  ;;  %v22_v10 = vld [vmem:[%s261_s0 + $0x50] sm:$0xff]  ;;  %v90_v41 = vshrl.u32 %v89_v40, 7  ;;  %v111_v57 = vand.u32 127, %v89_v40 }
   0xa   :  { %30 = vxpose.xlu0.b32.cont [3/16] (narrow) %v14_v2, 16  ;;  %v23_v11 = vld [vmem:[%s261_s0 + $0x58] sm:$0xff]  ;;  %v24_v12 = vld [vmem:[%s261_s0 + $0x60] sm:$0xff]  ;;  %v25_v13 = vld [vmem:[%s261_s0 + $0x68] sm:$0xff] }
   0xb   :  { %v26_v14 = vld [vmem:[%s261_s0 + $0x70] sm:$0xff]  ;;  %v27_v15 = vld [vmem:[%s261_s0 + $0x78] sm:$0xff]  ;;  %v91_v42 = vadd.s32 8, %v90_v41  ;;  %v145_v43 = vld [vmem:[%s262_s1] ss:$0 sm:$0xff]  ;;  %vm114_vm3 = vcmp.lt.s32.totalorder %v111_v57, 8 }
   0xc   :  { %vm96_vm1 = vcmp.eq.s32.totalorder %v90_v41, %v145_v43  ;;  %s179_s1 = smov [#allocation2]   ;;  %vm127_vm5 = vcmp.eq.s32.totalorder %v111_v57, 0 }
   0xd   :  { %vm97_vm2 = vcmp.eq.s32.totalorder %v91_v42, %v145_v43  ;;  %s137_s14 = sshll.u32 %s179_s1, 4  ;;  %s138_s14 = int_to_ptr.vmem [resolvable:$true] %s137_s14 }
   0xe   :  { %31 = vxpose.xlu0.b32.cont [4/16] (narrow) %v15_v3, 16  ;;  %s155_s16 = scalar_lea.vmem %s138_s14, 16  ;;  %s159_s17 = scalar_lea.vmem %s138_s14, 32 }
   0xf   :  { %p156_p0 = scmp.ne.s32.totalorder %s138_s14, %s155_s16  ;;  %p160_p1 = scmp.lt.s32.totalorder %s138_s14, %s138_s14 }
  0x10   :  { %p161_p2 = scmp.lt.s32.totalorder %s159_s17, %s155_s16 }
  0x12   :  { %32 = vxpose.xlu0.b32.cont [5/16] (narrow) %v16_v4, 16  ;;  %p162_p3 = por %p161_p2, %p160_p1 }
  0x14   :  { %p163_p4 = pnand %p162_p3, %p156_p0 }
  0x16   :  { %33 = vxpose.xlu0.b32.cont [6/16] (narrow) %v17_v5, 16 }
  0x1a   :  { %34 = vxpose.xlu0.b32.cont [7/16] (narrow) %v18_v6, 16 }
  0x1e   :  { %35 = vxpose.xlu0.b32.cont [8/16] (narrow) %v19_v7, 16 }
  0x22   :  { %36 = vxpose.xlu0.b32.cont [9/16] (narrow) %v20_v8, 16 }
  0x26   :  { %37 = vxpose.xlu0.b32.cont [10/16] (narrow) %v21_v9, 16 }
  0x2a   :  { %38 = vxpose.xlu0.b32.cont [11/16] (narrow) %v22_v10, 16 }
  0x2e   :  { %39 = vxpose.xlu0.b32.cont [12/16] (narrow) %v23_v11, 16 }
  0x32   :  { %40 = vxpose.xlu0.b32.cont [13/16] (narrow) %v24_v12, 16 }
  0x36   :  { %41 = vxpose.xlu0.b32.cont [14/16] (narrow) %v25_v13, 16 }
  0x3a   :  { %42 = vxpose.xlu0.b32.cont [15/16] (narrow) %v26_v14, 16 }
  0x3e   :  { %43 = vxpose.xlu0.b32.end [16/16] (narrow) %v27_v15, 16 }
  0x82   :  { %v44_v16 = vpop.trf.xlu0 }
  0x86   :  { %v45_v17 = vpop.trf.xlu0 }
  0x87   :  { %v62_v18 = vsel %vm61_vm0, %v45_v17, -inf }
  0x88   :  { %v63_v19 = vmax.f32 %v44_v16, %v62_v18 }
  0x8a   :  { %v64_v20 = vrot.slane %v63_v19, 4 }
  0x8c   :  { %v65_v21 = vmax.f32 %v63_v19, %v64_v20 }
  0x8e   :  { %v66_v22 = vrot.slane %v65_v21, 2 }
  0x90   :  { %v67_v23 = vmax.f32 %v65_v21, %v66_v22 }
  0x92   :  { %v68_v24 = vrot.slane %v67_v23, 1 }
  0x94   :  { %v69_v25 = vmax.f32 %v67_v23, %v68_v24 }
  0x96   :  { %v70_v26 = vsub.f32 %v44_v16, %v69_v25  ;;  %v71_v27 = vsub.f32 %v45_v17, %v69_v25 }
  0x98   :  { %v72_v28 = vmul.f32 1.442695, %v70_v26  ;;  %v74_v29 = vmul.f32 1.442695, %v71_v27 }
  0x9a   :  { %149 = vpow2.f32 %v72_v28 }
  0x9b   :  { %151 = vpow2.f32 %v74_v29 }
  0xa4   :  { %v150_v30 = vpop.eup %149 }
  0xa5   :  { %v152_v31 = vpop.eup %151 }
  0xa6   :  { %v76_v32 = vsel %vm61_vm0, %v152_v31, 0.0 }
  0xa7   :  { %v77_v33 = vadd.f32 %v150_v30, %v76_v32 }
  0xa9   :  { %v78_v34 = vrot.slane %v77_v33, 4 }
  0xab   :  { %v79_v35 = vadd.f32 %v78_v34, %v77_v33 }
  0xad   :  { %v80_v36 = vrot.slane %v79_v35, 2 }
  0xaf   :  { %v81_v37 = vadd.f32 %v80_v36, %v79_v35 }
  0xb1   :  { %v82_v38 = vrot.slane %v81_v37, 1 }
  0xb3   :  { %v83_v39 = vadd.f32 %v82_v38, %v81_v37 }
  0xb5   :  { %153 = vrcp.f32 %v83_v39 }
  0xbf   :  { %v154_v44 = vpop.eup %153 }
  0xc0   :  { %v85_v45 = vmul.f32 %v154_v44, %v150_v30  ;;  %v86_v46 = vmul.f32 %v154_v44, %v152_v31 }
  0xc2   :  { %v87_v47 = vmax.f32 %v85_v45, 1e-07  ;;  %v88_v48 = vmax.f32 %v86_v46, 1e-07 }
  0xc4   :  { %v98_v49 = vsel %vm96_vm1, 0.0, %v87_v47  ;;  %v99_v50 = vsel %vm97_vm2, 0.0, %v88_v48 }
  0xc5   :  { %v100_v51 = vsel %vm61_vm0, %v99_v50, 0.0 }
  0xc6   :  { %v101_v52 = vadd.f32 %v100_v51, %v98_v49 }
  0xc8   :  { %v102_v53 = vrot.slane %v101_v52, 4 }
  0xca   :  { %v103_v54 = vadd.f32 %v102_v53, %v101_v52 }
  0xcc   :  { %v104_v55 = vrot.slane %v103_v54, 2 }
  0xce   :  { %v105_v56 = vadd.f32 %v104_v55, %v103_v54 }
  0xd0   :  { %v106_v58 = vrot.slane %v105_v56, 1 }
  0xd2   :  { %v107_v59 = vadd.f32 %v106_v58, %v105_v56 }
  0xd4   :  { %v108_v60 = vmul.f32 9.2103405, %v107_v59 }
  0xd6   :  { %v115_v61 = vsel %vm114_vm3, %v108_v60, 0.0 }
  0xd7   :  { %v117_v62 = vsel %vm116_vm4, %v115_v61, 0.0 }
  0xd8   :  { %118 = vadd.xlane.f32.xlu1 %v117_v62 }
 0x165   :  { %v119_v63 = vpop.xlane.xlu1 %118 }
 0x166   :  { %v120_v0 = vrot.slane %v119_v63, 4 }
 0x168   :  { %v121_v1 = vadd.f32 %v120_v0, %v119_v63 }
 0x16a   :  { %v122_v2 = vrot.slane %v121_v1, 2 }
 0x16c   :  { %v123_v3 = vadd.f32 %v122_v2, %v121_v1 }
 0x16e   :  { %v124_v4 = vrot.slane %v123_v3, 1 }
 0x170   :  { %v125_v5 = vadd.f32 %v124_v4, %v123_v3 }
 0x172   :  { %146 = vpush %v125_v5 }
 0x1a3   :  { %s147_s15 = spop %146 }
 0x1a4   :  { %v128_v6 = vstv %s147_s15 }
 0x1a5   :  { %v129_v7 = vsel %vm127_vm5, %v128_v6, 0.0 }
 0x1a6   :  { %130 = vst [vmem:[#allocation2] sm:$0x1] %v129_v7 }
 0x1a7   :  { %166 = shalt.err (!%p163_p4)
}
 0x1a8   :  { %s167_s20 = scalar_lea.hbm %s263_s2, 16 }
 0x1a9   :  { %p168_p5 = scmp.ne.s32.totalorder %s263_s2, %s167_s20  ;;  %p171_p6 = scmp.lt.u32.totalorder %s167_s20, %s263_s2 }
 0x1ab   :  { %p173_p7 = pnand %p171_p6, %p168_p5 }
 0x1ad   :  { %176 = shalt.err (!%p173_p7)
}
 0x1ae   :  { %140 = dma.vmem_to_hbm [thread:$0]  %s138_s14, 16, %s263_s2, [#allocation3]  }
 0x1af   :  { %177 = dma.done.wait [#allocation3], 16  }
 0x1b0   :  { %178 = vsyncadd [#allocation3], 4294967280 }
 0x1b1   :  { %144 = vsyncpa [#allocation3], 1 }

</bundles_post_ra>
